<compile_context>
chip_gen: v6e
topology: v6e:2x2x1
jax: 0.10.0
libtpu: 0.0.40
codegen_flags: <defaults>
</compile_context>

<pallas_src>
import functools
import itertools
from math import sqrt

import jax
import jax.numpy as jnp
from jax.experimental import pallas as pl
from jax.experimental.pallas import tpu as pltpu

LANE = 128
SUBLANE = 8
K_TILE = 256                 # reduction tile (multiple of 128 -> also fine on v5e's 128-MXU)
L_TILE_F32 = 512             # lane tile for 4-byte operands
L_TILE_16 = 1024             # lane tile for <=2-byte operands
VMEM_LIMIT_CAP = 48 * 1024 * 1024   # stay within v7x's 64 MiB physical VMEM


def _tuple(v, N):
    return tuple(v) if isinstance(v, (tuple, list)) else (v,) * N


def _round_up(x, m):
    return (x + m - 1) // m * m


# ------------------------------- Pallas kernel -------------------------------

def _conv_matmul_kernel(has_bias, *refs):
    # refs = (p_ref, w_ref, [b_ref,] o_ref, acc_ref)
    if has_bias:
        p_ref, w_ref, b_ref, o_ref, acc_ref = refs
    else:
        p_ref, w_ref, o_ref, acc_ref = refs

    k = pl.program_id(2)

    @pl.when(k == 0)
    def _init():
        acc_ref[...] = jnp.zeros_like(acc_ref)

    # (Cog_p, tk) @ (tk, tl) on the MXU, accumulating in f32.
    acc_ref[...] += jnp.dot(w_ref[0], p_ref[0], preferred_element_type=jnp.float32)

    @pl.when(k == pl.num_programs(2) - 1)
    def _finalize():
        acc = acc_ref[...]
        if has_bias:
            acc = acc + b_ref[0]          # (Cog_p, 1) broadcasts over the lane dim
        o_ref[0] = acc.astype(o_ref.dtype)


def _grouped_conv_matmul(patches, weight, bias, out_dtype):
    """patches: [G, K, L], weight: [G, Cog, K], bias: [G*Cog] or None -> [G, Cog, L]."""
    G, K, L = patches.shape
    Cog = weight.shape[1]
    in_bytes = jnp.dtype(patches.dtype).itemsize
    out_bytes = jnp.dtype(out_dtype).itemsize

    # --- tile selection ------------------------------------------------------
    Cog_p = _round_up(Cog, SUBLANE)

    if K <= K_TILE:
        tk, Kp = K, K                       # single reduction step, full-K block
    else:
        tk = K_TILE
        Kp = _round_up(K, tk)

    l_tile = L_TILE_16 if in_bytes <= 2 else L_TILE_F32
    if L <= l_tile:
        Lp = _round_up(L, LANE)             # lane-dense output, padded once
        tl = Lp
    else:
        tl = l_tile
        Lp = _round_up(L, tl)

    nk = Kp // tk
    nl = Lp // tl

    # --- zero-pad operands to the tiled shapes (zeros contribute nothing) ----
    if (Kp, Lp) != (K, L):
        patches = jnp.pad(patches, ((0, 0), (0, Kp - K), (0, Lp - L)))
    if (Cog_p, Kp) != (Cog, K):
        weight = jnp.pad(weight, ((0, 0), (0, Cog_p - Cog), (0, Kp - K)))

    has_bias = bias is not None
    inputs = [patches, weight]
    in_specs = [
        pl.BlockSpec((1, tk, tl), lambda g, l, k: (g, k, l)),
        pl.BlockSpec((1, Cog_p, tk), lambda g, l, k: (g, 0, k)),
    ]
    if has_bias:
        bias_g = bias.astype(jnp.float32).reshape(G, Cog, 1)
        if Cog_p != Cog:
            bias_g = jnp.pad(bias_g, ((0, 0), (0, Cog_p - Cog), (0, 0)))
        inputs.append(bias_g)
        in_specs.append(pl.BlockSpec((1, Cog_p, 1), lambda g, l, k: (g, 0, 0)))

    flops = 2 * G * Cog_p * Kp * Lp
    bytes_accessed = (G * Kp * Lp * in_bytes              # patches read once
                      + nl * G * Cog_p * Kp * in_bytes    # weight tiles re-read per L tile
                      + G * Cog_p * Lp * out_bytes)       # output writeback

    vmem_est = (2 * tk * tl * in_bytes          # patches (double-buffered)
                + 2 * Cog_p * tk * in_bytes     # weight  (double-buffered)
                + Cog_p * tl * 4                # f32 accumulator scratch
                + 2 * Cog_p * tl * out_bytes)   # output  (double-buffered)
    vmem_limit = int(min(max(2 * vmem_est, 32 * 1024 * 1024), VMEM_LIMIT_CAP))

    out = pl.pallas_call(
        functools.partial(_conv_matmul_kernel, has_bias),
        out_shape=jax.ShapeDtypeStruct((G, Cog_p, Lp), out_dtype),
        grid_spec=pltpu.PrefetchScalarGridSpec(
            num_scalar_prefetch=0,
            grid=(G, nl, nk),                 # reduction (K) axis last / innermost
            in_specs=in_specs,
            out_specs=pl.BlockSpec((1, Cog_p, tl), lambda g, l, k: (g, 0, l)),
            scratch_shapes=[pltpu.VMEM((Cog_p, tl), jnp.float32)],
        ),
        compiler_params=pltpu.CompilerParams(
            dimension_semantics=("parallel", "parallel", "arbitrary"),
            vmem_limit_bytes=vmem_limit,
        ),
        cost_estimate=pl.CostEstimate(
            flops=flops, transcendentals=0, bytes_accessed=bytes_accessed),
    )(*inputs)

    return out[:, :Cog, :L]


# --------------------------------- glue (JAX) ---------------------------------

def _resolve_padding(padding, kernel_size, stride, dilation, N):
    """Return list of (lo, hi) pads per spatial dim (PyTorch semantics)."""
    if isinstance(padding, str):
        if padding == "valid":
            return [(0, 0)] * N
        if padding == "same":
            if any(s != 1 for s in stride):
                raise ValueError("padding='same' requires stride=1")
            pads = []
            for d in range(N):
                total = dilation[d] * (kernel_size[d] - 1)
                lo = total // 2
                pads.append((lo, total - lo))
            return pads
        raise ValueError(f"Unknown padding string: {padding}")
    pad = _tuple(padding, N)
    return [(p, p) for p in pad]


def _im2col(x, kernel_size, stride, pads, dilation):
    """x: [B, C, *spatial] -> (patches [B, C, prodK, *out_spatial], out_sizes)."""
    spatial = x.shape[2:]
    N = len(kernel_size)
    xp = jnp.pad(x, [(0, 0), (0, 0)] + list(pads))
    out_sizes = [
        (spatial[d] + pads[d][0] + pads[d][1]
         - dilation[d] * (kernel_size[d] - 1) - 1) // stride[d] + 1
        for d in range(N)
    ]
    slabs = []
    for offs in itertools.product(*[range(k) for k in kernel_size]):
        sl = [slice(None), slice(None)]
        for d, o in enumerate(offs):
            start = o * dilation[d]
            stop = start + stride[d] * (out_sizes[d] - 1) + 1
            sl.append(slice(start, stop, stride[d]))
        slabs.append(xp[tuple(sl)])
    patches = jnp.stack(slabs, axis=2)  # [B, C, prodK, *out_spatial]
    return patches, out_sizes


def conv_nd_forward(x, weight, bias, stride, padding, dilation, groups):
    """Forward pass of ConvNd.

    x:      [B, in_channels, *spatial]
    weight: [out_channels, in_channels // groups, *kernel_size]
    bias:   [out_channels] or None
    Returns [B, out_channels, *output_spatial] in x.dtype.
    """
    N = weight.ndim - 2
    kernel_size = tuple(weight.shape[2:])
    stride = _tuple(stride, N)
    dilation = _tuple(dilation, N)
    pads = _resolve_padding(padding, kernel_size, stride, dilation, N)

    B, Cin = x.shape[0], x.shape[1]
    Cout = weight.shape[0]
    G = groups
    Cpg = Cin // G
    Cog = Cout // G
    prodK = 1
    for kk in kernel_size:
        prodK *= kk
    K = Cpg * prodK
    compute_dt = x.dtype

    patches, out_sizes = _im2col(x, kernel_size, stride, pads, dilation)
    P = 1
    for o in out_sizes:
        P *= o

    # [B, C, prodK, *out] -> [B, G, K, P] -> [G, K, B*P]
    # (fold the batch into the lane axis: weight tiles are shared across all lane tiles,
    #  and the lane axis is padded to 128 only once, keeping stores lane-dense).
    patches = patches.reshape(B, G, K, P)
    patches = jnp.transpose(patches, (1, 2, 0, 3)).reshape(G, K, B * P)

    # weight [Cout, Cpg, *k] -> [G, Cog, K]; row-major merge matches the patches' K order.
    weight_g = weight.reshape(G, Cog, K).astype(compute_dt)

    out = _grouped_conv_matmul(patches.astype(compute_dt), weight_g, bias, compute_dt)

    # [G, Cog, B*P] -> [B, G*Cog, *out]
    out = out.reshape(G, Cog, B, P)
    out = jnp.transpose(out, (2, 0, 1, 3)).reshape(B, Cout, *out_sizes)
    return out


def init_conv_params(key, N, in_channels, out_channels, kernel_size, groups=1, bias=True):
    """Deterministic init mirroring PyTorch's Conv reset_parameters
    (kaiming_uniform_ with a=sqrt(5) == U(-1/sqrt(fan_in), 1/sqrt(fan_in)))."""
    kernel_size = _tuple(kernel_size, N)
    w_shape = (out_channels, in_channels // groups, *kernel_size)
    fan_in = in_channels // groups
    for kk in kernel_size:
        fan_in *= kk
    bound = 1.0 / sqrt(fan_in)
    kw, kb = jax.random.split(key)
    weight = jax.random.uniform(kw, w_shape, jnp.float32, minval=-bound, maxval=bound)
    b = (jax.random.uniform(kb, (out_channels,), jnp.float32, minval=-bound, maxval=bound)
         if bias else None)
    return weight, b


def _reference_conv(x, weight, bias, stride, padding, dilation, groups):
    """Pure-XLA reference (same semantics as torch.nn.functional.conv{1,2,3}d)."""
    N = weight.ndim - 2
    kernel_size = tuple(weight.shape[2:])
    stride_t = _tuple(stride, N)
    dil_t = _tuple(dilation, N)
    pads = _resolve_padding(padding, kernel_size, stride_t, dil_t, N)
    out = jax.lax.conv_general_dilated(
        x.astype(jnp.float32), weight.astype(jnp.float32),
        window_strides=stride_t, padding=pads, rhs_dilation=dil_t,
        feature_group_count=groups)
    if bias is not None:
        out = out + bias.astype(jnp.float32).reshape((1, -1) + (1,) * N)
    return out


# ----------------------------------- demo -------------------------------------

if __name__ == "__main__":
    key = jax.random.PRNGKey(0)
    k1, k2, k3, k4 = jax.random.split(key, 4)

    # --- check 1: grouped 2D conv, f32, with bias ------------------------------
    N = 2
    B, Cin, Cout, H, W = 2, 4, 8, 16, 16
    ksize, stride, padding, dilation, groups = 3, 1, 1, 1, 2
    x = jax.random.normal(k1, (B, Cin, H, W), jnp.float32)
    weight, bias = init_conv_params(k2, N, Cin, Cout, ksize, groups=groups, bias=True)

    out = jax.block_until_ready(
        conv_nd_forward(x, weight, bias, stride, padding, dilation, groups))
    ref = _reference_conv(x, weight, bias, stride, padding, dilation, groups)
    assert out.shape == ref.shape, (out.shape, ref.shape)
    assert out.dtype == x.dtype
    assert jnp.allclose(out, ref, atol=1e-4, rtol=1e-4), float(jnp.max(jnp.abs(out - ref)))

    # --- check 2: strided + dilated conv, no bias, odd spatial (lane-padding path)
    x2 = jax.random.normal(k3, (2, 3, 15, 15), jnp.float32)
    w2, _ = init_conv_params(k4, 2, 3, 5, 3, groups=1, bias=False)
    out2 = jax.block_until_ready(conv_nd_forward(x2, w2, None, 2, 0, 2, 1))
    ref2 = _reference_conv(x2, w2, None, 2, 0, 2, 1)
    assert out2.shape == ref2.shape, (out2.shape, ref2.shape)
    assert jnp.allclose(out2, ref2, atol=1e-4, rtol=1e-4), float(jnp.max(jnp.abs(out2 - ref2)))

    # --- check 3: bf16 operands (native-dtype path, f32 accumulation, bf16 output)
    xb = x.astype(jnp.bfloat16)
    wb = weight.astype(jnp.bfloat16)
    bb = bias.astype(jnp.bfloat16)
    out3 = jax.block_until_ready(
        conv_nd_forward(xb, wb, bb, stride, padding, dilation, groups))
    assert out3.dtype == jnp.bfloat16
    ref3 = _reference_conv(xb, wb, bb, stride, padding, dilation, groups)
    err = float(jnp.max(jnp.abs(out3.astype(jnp.float32) - ref3)))
    assert err < 5e-2, err

    # --- check 4: 3D conv (N=3), grouped, with bias -----------------------------
    x4 = jax.random.normal(k1, (1, 3, 6, 6, 6), jnp.float32)
    w4, b4 = init_conv_params(k2, 3, 3, 6, 2, groups=3, bias=True)
    out4 = jax.block_until_ready(conv_nd_forward(x4, w4, b4, 1, 0, 1, 3))
    ref4 = _reference_conv(x4, w4, b4, 1, 0, 1, 3)
    assert out4.shape == ref4.shape, (out4.shape, ref4.shape)
    assert jnp.allclose(out4, ref4, atol=1e-4, rtol=1e-4), float(jnp.max(jnp.abs(out4 - ref4)))

    print("KERNEL_OK")
</pallas_src>

<mosaic_0001>
module attributes {stable_mosaic.version = 11 : i64} {
  func.func @_conv_matmul_kernel(%arg0: i32, %arg1: i32, %arg2: i32, %arg3: memref<1x18x512xf32, #tpu.memory_space<vmem>>, %arg4: memref<1x8x18xf32, #tpu.memory_space<vmem>>, %arg5: memref<1x8x1xf32, #tpu.memory_space<vmem>>, %arg6: memref<1x8x512xf32, #tpu.memory_space<vmem>>, %arg7: memref<8x512xf32, #tpu.memory_space<vmem>>) attributes {dimension_semantics = [#tpu.dimension_semantics<parallel>, #tpu.dimension_semantics<parallel>, #tpu.dimension_semantics<arbitrary>], iteration_bounds = array<i64: 2, 1, 1>, scalar_prefetch = 0 : i64, scratch_operands = 1 : i64, tpu.core_type = #tpu.core_type<tc>, window_params = [{transform_indices = @transform_0, window_bounds = array<i64: 1, 18, 512>}, {transform_indices = @transform_1, window_bounds = array<i64: 1, 8, 18>}, {transform_indices = @transform_2, window_bounds = array<i64: 1, 8, 1>}, {transform_indices = @transform_3, window_bounds = array<i64: 1, 8, 512>}]} {
    %c0_i32 = arith.constant 0 : i32
    %0 = arith.cmpi eq, %arg2, %c0_i32 : i32
    %1 = arith.extui %0 : i1 to i32
    %c0_i32_0 = arith.constant 0 : i32
    %2 = arith.cmpi ne, %1, %c0_i32_0 : i32
    scf.if %2 {
      %cst_12 = arith.constant 0.000000e+00 : f32
      %14 = vector.broadcast %cst_12 : f32 to vector<8x512xf32>
      %c0_13 = arith.constant 0 : index
      %c0_14 = arith.constant 0 : index
      %15 = vector.load %arg7[%c0_13, %c0_14] : memref<8x512xf32, #tpu.memory_space<vmem>>, vector<8x512xf32>
      tpu.vector_store %arg7[%c0_13, %c0_14], %14 {strides = array<i32>} : memref<8x512xf32, #tpu.memory_space<vmem>>, vector<8x512xf32>,
    } else {
    }
    %c0 = arith.constant 0 : index
    %c0_1 = arith.constant 0 : index
    %3 = vector.load %arg7[%c0, %c0_1] : memref<8x512xf32, #tpu.memory_space<vmem>>, vector<8x512xf32>
    %c0_2 = arith.constant 0 : index
    %c0_3 = arith.constant 0 : index
    %c0_4 = arith.constant 0 : index
    %4 = vector.load %arg4[%c0_2, %c0_3, %c0_4] : memref<1x8x18xf32, #tpu.memory_space<vmem>>, vector<1x8x18xf32>
    %5 = vector.shape_cast %4 : vector<1x8x18xf32> to vector<8x18xf32>
    %c0_5 = arith.constant 0 : index
    %c0_6 = arith.constant 0 : index
    %c0_7 = arith.constant 0 : index
    %6 = vector.load %arg3[%c0_5, %c0_6, %c0_7] : memref<1x18x512xf32, #tpu.memory_space<vmem>>, vector<1x18x512xf32>
    %7 = vector.shape_cast %6 : vector<1x18x512xf32> to vector<18x512xf32>
    %cst = arith.constant dense<0.000000e+00> : vector<8x512xf32>
    %8 = tpu.matmul %5, %7, %cst {dimension_numbers = #tpu.dot_dimension_numbers<[1], [0], [0], [1], [0, 0, 1, 1], [], []>} : vector<8x18xf32>, vector<18x512xf32>, vector<8x512xf32> -> vector<8x512xf32>
    %9 = arith.addf %3, %8 : vector<8x512xf32>
    %c0_8 = arith.constant 0 : index
    %c0_9 = arith.constant 0 : index
    %10 = vector.load %arg7[%c0_8, %c0_9] : memref<8x512xf32, #tpu.memory_space<vmem>>, vector<8x512xf32>
    tpu.vector_store %arg7[%c0_8, %c0_9], %9 {strides = array<i32>} : memref<8x512xf32, #tpu.memory_space<vmem>>, vector<8x512xf32>,
    %c0_i32_10 = arith.constant 0 : i32
    %11 = arith.cmpi eq, %arg2, %c0_i32_10 : i32
    %12 = arith.extui %11 : i1 to i32
    %c0_i32_11 = arith.constant 0 : i32
    %13 = arith.cmpi ne, %12, %c0_i32_11 : i32
    scf.if %13 {
      %c0_12 = arith.constant 0 : index
      %c0_13 = arith.constant 0 : index
      %14 = vector.load %arg7[%c0_12, %c0_13] : memref<8x512xf32, #tpu.memory_space<vmem>>, vector<8x512xf32>
      %c0_14 = arith.constant 0 : index
      %c0_15 = arith.constant 0 : index
      %c0_16 = arith.constant 0 : index
      %15 = vector.load %arg5[%c0_14, %c0_15, %c0_16] : memref<1x8x1xf32, #tpu.memory_space<vmem>>, vector<1x8x1xf32>
      %16 = vector.shape_cast %15 : vector<1x8x1xf32> to vector<8x1xf32>
      %17 = vector.broadcast %16 : vector<8x1xf32> to vector<8x512xf32>
      %18 = arith.addf %14, %17 : vector<8x512xf32>
      %c0_17 = arith.constant 0 : index
      %c0_18 = arith.constant 0 : index
      %c0_19 = arith.constant 0 : index
      %19 = vector.load %arg6[%c0_17, %c0_18, %c0_19] : memref<1x8x512xf32, #tpu.memory_space<vmem>>, vector<1x8x512xf32>
      %20 = vector.shape_cast %19 : vector<1x8x512xf32> to vector<8x512xf32>
      %21 = vector.shape_cast %18 : vector<8x512xf32> to vector<1x8x512xf32>
      tpu.vector_store %arg6[%c0_17, %c0_18, %c0_19], %21 {strides = array<i32>} : memref<1x8x512xf32, #tpu.memory_space<vmem>>, vector<1x8x512xf32>,
    } else {
    }
    return
  }
  func.func @transform_0(%arg0: i32, %arg1: i32, %arg2: i32) -> (i32, i32, i32) {
    %c0_i32 = arith.constant 0 : i32
    return %arg0, %arg2, %arg1 : i32, i32, i32
  }
  func.func @transform_1(%arg0: i32, %arg1: i32, %arg2: i32) -> (i32, i32, i32) {
    %c0_i32 = arith.constant 0 : i32
    %c0_i32_0 = arith.constant 0 : i32
    return %arg0, %c0_i32, %arg2 : i32, i32, i32
  }
  func.func @transform_2(%arg0: i32, %arg1: i32, %arg2: i32) -> (i32, i32, i32) {
    %c0_i32 = arith.constant 0 : i32
    %c0_i32_0 = arith.constant 0 : i32
    %c0_i32_1 = arith.constant 0 : i32
    return %arg0, %c0_i32, %c0_i32_0 : i32, i32, i32
  }
  func.func @transform_3(%arg0: i32, %arg1: i32, %arg2: i32) -> (i32, i32, i32) {
    %c0_i32 = arith.constant 0 : i32
    %c0_i32_0 = arith.constant 0 : i32
    return %arg0, %c0_i32, %arg1 : i32, i32, i32
  }
}

</mosaic_0001>

<bundles_post_ra>
// kernel: tpu_custom_call.1
= control target key start
LH: loop header
LB: loop body
LE: loop exit
PB: predicated region body
PF: predicated region fallthrough
CT: control target
= control target key end

     0   :  { %8 = vsyncpa [#allocation4], 0  ;;  %s905_s0 = inlined_call_operand.vmem [shape: f32[2,18,512], index: 0, kind: input, shape index: {}]   ;;  %s906_s1 = inlined_call_operand.vmem [shape: f32[2,8,18], index: 1, kind: input, shape index: {}]   ;;  %s907_s2 = inlined_call_operand.vmem [shape: f32[2,8,1], index: 2, kind: input, shape index: {}]   ;;  %s908_s3 = inlined_call_operand.hbm [shape: f32[2,8,512], index: 3, kind: output, shape index: {}]  }
   0x1   :  { %10 = vsyncpa [#allocation4 + $0x1], 0  ;;  %s794_s12 = smov 0   ;;  %s796_s13 = smov 0  }
   0x2   :  { %s798_s14 = smov 0   ;;  %s800_s15 = smov 0  }
   0x3   :  { %s802_s16 = smov 0   ;;  %s804_s17 = smov 0  }
   0x4 LB: > { %s613_s18 = sadd.s32 4294967295, %s769_s17   ;;  %s614_s19 = sadd.s32 4294967294, %s769_s17   ;;  %s769_s17 = sphi %s804_s17, %s16_s17   ;;  %s765_s16 = sphi %s802_s16, %s915_s16   ;;  %s761_s15 = sphi %s800_s15, %s914_s15   ;;  %s757_s14 = sphi %s798_s14, %s913_s14   ;;  %s753_s13 = sphi %s796_s13, %s912_s13   ;;  %s749_s12 = sphi %s794_s12, %s911_s12  }
   0x5   : > { %s35_s20 = sadd.s32 1, %s765_s16  ;;  %s128_s21 = sadd.s32 1, %s757_s14 }
   0x6   : > { %p37_p0 = scmp.ge.s32.totalorder %s35_s20, 2  ;;  %p138_p1 = scmp.ne.s32.totalorder %s757_s14, %s753_s13 }
   0x7   : > { %p139_p2 = scmp.eq.s32.totalorder %s613_s18, 1  ;;  %p144_p3 = scmp.ne.s32.totalorder %s753_s13, %s749_s12 }
   0x8   : > { %s917_s20 = smov (%p37_p0, %s35_s20), 0  ;;  %p145_p5 = scmp.eq.s32.totalorder %s614_s19, 1 }
   0x9   : > { %p834_p4 = por %p139_p2, %p138_p1  ;;  %s123_s23 = ssub.s32 %s765_s16, %s917_s20 }
   0xa   : > { %p617_p6 = scmp.ge.s32.totalorder %s769_s17, 1  ;;  %p126_p7 = scmp.eq.s32.totalorder %s123_s23, 0 }
   0xb   : > { %p841_p8 = por %p145_p5, %p144_p3  ;;  %p199_p9 = scmp.lt.s32.totalorder %s769_s17, 3 }
   0xc   : > { %s847_s25 = scalar_select %p126_p7, %s757_s14, %s128_s21  }
   0xd   : > { %p200_p10 = pnand %p617_p6, %p199_p9 }
   0xe   : > { %p245_p11 = scmp.lt.s32.totalorder (!%p200_p10), %s761_s15, 1  ;;  %s240_s11 = sand.u32 (!%p200_p10), 1, %s753_s13  }
   0xf   : > { %203 = sbr.rel (%p200_p10) target bundleno = 242 (0xf2), region = 32  ;;  %s618_s18 = sshll.u32 (!%p200_p10), %s240_s11, 5 }
  0x10   : > { %s633_s19 = sshll.u32 (!%p200_p10), %s761_s15, 9  ;;  %s242_s21 = scalar_lea.vmem (!%p200_p10), [#allocation3], %s618_s18 }
  0x11   : > { %s501_s23 = sshll.u32 (!%p200_p10), %s242_s21, 4  ;;  %s773_s30 = smov (!%p200_p10), [#allocation3]   ;;  %s502_s23 = int_to_ptr.vmem [resolvable:$true] %s501_s23 }
  0x12   : > { %s693_s29 = scalar_lea.vmem (!%p200_p10), %s502_s23, 512 }
  0x13   : > { %p694_p12 = scmp.ne.s32.totalorder (!%p200_p10), %s502_s23, %s693_s29 }
  0x14   : > { %v771_v0 = vmov 0.0   ;;  %s246_s26 = scalar_select %p245_p11, %s761_s15, 1  ;;  %v772_v1 = vmov 0   ;;  %vm300_vm0 = vcmask 1041408   ;;  %vm296_vm1 = vcmask 146432  }
  0x15   : > { %377 = vmatprep.mubr.f32.mxu0 %v771_v0  ;;  %448 = vmatprep.mubr.f32.mxu1 %v771_v0  ;;  %s485_s15 = scalar_lea.sflag [#allocation4], %s240_s11  ;;  %p695_p13 = pnand %p694_p12, %p834_p4 }
  0x16   : > { %692 = vset.pattern.permute.xlu0 %v772_v1  ;;  %s634_s27 = smul.u32 96, %s246_s26  ;;  %s620_s28 = sshll.u32 %s246_s26, 3 }
  0x17   : > { %s269_s4 = scalar_lea.vmem %s907_s2, %s620_s28  ;;  %s265_s10 = scalar_lea.vmem %s906_s1, %s620_s28 }
  0x18   : > { %s256_s7 = scalar_lea.vmem %s905_s0, %s634_s27  ;;  %v470_v2 = vld [vmem:[%s269_s4] sm:$0xff]  ;;  %s865_s28 = scalar_lea.hbm %s908_s3, %s633_s19 }
  0x19   : > { %v293_v3 = vld [vmem:[%s256_s7 + $0x48] sm:$0x3]  ;;  %v295_v4 = vld [vmem:[%s256_s7 + $0x58] sm:$0x3]  ;;  %v292_v5 = vld [vmem:[%s256_s7 + $0x40] sm:$0x3]  ;;  %473 = vperm.xlu0 %692, %v470_v2   ;;  %p696_p0 = pneg %p695_p13 }
  0x1a   : > { %622 = vmatprep.subr.msk.mxu0 %vm300_vm0, %v293_v3  ;;  %625 = vmatprep.subr.msk.mxu1 %vm300_vm0, %v295_v4  ;;  %v294_v6 = vld [vmem:[%s256_s7 + $0x50] sm:$0x3]  ;;  %v289_v7 = vld [vmem:[%s256_s7 + $0x28] sm:$0xff]  ;;  %v291_v8 = vld [vmem:[%s256_s7 + $0x38] sm:$0xff]  ;;  %s697_s4 = sshll.u32 %s773_s30, 4  ;;  %s698_s4 = int_to_ptr.vmem [resolvable:$false] %s697_s4 }
  0x1b   : > { %623 = vmatpush1.msk.msra.mxu0 %vm300_vm0, %v292_v5  ;;  %626 = vmatpush1.msk.msra.mxu1 %vm300_vm0, %v294_v6  ;;  %v288_v9 = vld [vmem:[%s256_s7 + $0x20] sm:$0xff]  ;;  %v290_v10 = vld [vmem:[%s256_s7 + $0x30] sm:$0xff]  ;;  %v285_v11 = vld [vmem:[%s256_s7 + $0x8] sm:$0xff]  ;;  %s699_s5 = scalar_lea.vmem %s698_s4, 1024  ;;  %p700_p1 = scmp.lt.s32.totalorder %s502_s23, %s698_s4 }
  0x1c   : > { %341 = vmatprep.subr.mxu0 %v289_v7  ;;  %412 = vmatprep.subr.mxu1 %v291_v8  ;;  %v287_v12 = vld [vmem:[%s256_s7 + $0x18] sm:$0xff]  ;;  %v284_v13 = vld [vmem:[%s256_s7] sm:$0xff]  ;;  %v286_v14 = vld [vmem:[%s256_s7 + $0x10] sm:$0xff]  ;;  %p701_p2 = scmp.lt.s32.totalorder %s699_s5, %s693_s29 }
  0x1d   : > { %342 = vmatpush1.msra.mxu0 %v288_v9  ;;  %413 = vmatpush1.msra.mxu1 %v290_v10  ;;  %v283_v15 = vld [vmem:[%s265_s10] sm:$0xff] }
  0x1e   : > { %343 = vmatprep.subr.mxu0 %v285_v11  ;;  %414 = vmatprep.subr.mxu1 %v287_v12  ;;  %p702_p3 = por %p701_p2, %p700_p1 }
  0x1f   : > { %344 = vmatpush1.msra.mxu0 %v284_v13  ;;  %415 = vmatpush1.msra.mxu1 %v286_v14 }
  0x20   : > { %624 = vmatmul.mubr.msk.f32.vlgmr.msra.gmra.mxu0 %vm296_vm1, %v283_v15  ;;  %627 = vmatmul.mubr.msk.f32.vlgmr.msra.gmra.mxu1 %vm296_vm1, %v283_v15  ;;  %p703_p5 = pnand %p702_p3, %p696_p0 }
  0x94   : > { %v474_v16 = vpop.permute.xlu0 %473 }
  0xe0   : > { %v379_v17 = vpop.f32.mrf.mxu0  ;;  %v450_v18 = vpop.f32.mrf.mxu1 }
  0xe1   : > { %v476_v19 = vadd.f32 %v474_v16, %v379_v17  ;;  %v478_v20 = vadd.f32 %v474_v16, %v450_v18 }
  0xe2   : > { %v381_v21 = vpop.f32.mrf.mxu0  ;;  %v452_v22 = vpop.f32.mrf.mxu1 }
  0xe3   : > { %480 = vst [vmem:[%s242_s21] sm:$0xff] %v476_v19  ;;  %482 = vst [vmem:[%s242_s21 + $0x10] sm:$0xff] %v478_v20  ;;  %v477_v23 = vadd.f32 %v474_v16, %v381_v21  ;;  %v479_v24 = vadd.f32 %v474_v16, %v452_v22 }
  0xe5   : > { %481 = vst [vmem:[%s242_s21 + $0x8] sm:$0xff] %v477_v23  ;;  %483 = vst [vmem:[%s242_s21 + $0x18] sm:$0xff] %v479_v24 }
  0xe6   : > { %706 = shalt.err (!%p703_p5)
}
  0xe7   : > { %s707_s6 = scalar_lea.hbm %s865_s28, 512  ;;  %s711_s9 = scalar_lea.hbm %s908_s3, 1024 }
  0xe8   : > { %p708_p6 = scmp.ne.s32.totalorder %s865_s28, %s707_s6  ;;  %p712_p10 = scmp.lt.s32.totalorder %s865_s28, %s908_s3 }
  0xe9   : > { %p713_p11 = scmp.lt.s32.totalorder %s711_s9, %s707_s6 }
  0xea   : > { %p709_p7 = pnand %p708_p6, %p834_p4 }
  0xeb   : > { %p714_p12 = por %p713_p11, %p712_p10 }
  0xec   : > { %p710_p9 = pneg %p709_p7 }
  0xee   : > { %p715_p13 = pnand %p714_p12, %p710_p9 }
  0xf0   : > { %718 = shalt.err (!%p715_p13)
}
  0xf1   : > { %635 = dma.vmem_to_hbm [thread:$0]  (%p834_p4), %s502_s23, 512, %s865_s28, %s485_s15  }
  0xf2 PF: > { %p641_p0 = scmp.ge.s32.totalorder %s769_s17, 2  ;;  %s513_s18 = sand.u32 1, %s749_s12  }
  0xf3   : > { %s514_s19 = scalar_lea.sflag [#allocation4], %s513_s18 }
  0xf4   : > { %p638_p1 = pnand %p641_p0, %p841_p8 }
  0xf6   : > { %p639_p2 = pneg %p638_p1 }
  0xf8   : > { %744 = dma.done.wait (%p639_p2), %s514_s19, 512  }
  0xf9   : > { %746 = vsyncadd (%p639_p2), %s514_s19, 4294966784  ;;  %s16_s17 = sadd.s32 1, %s769_s17   ;;  %s911_s12 = smov %s753_s13 }
  0xfa   : > { %p13_p3 = scmp.ge.s32.totalorder %s16_s17, 4   ;;  %s912_s13 = smov %s757_s14 }
  0xfb   : > { %s913_s14 = smov %s847_s25  ;;  %s914_s15 = smov %s765_s16 }
  0xfc   : > { %s915_s16 = smov %s917_s20  ;;  %15 = sbr.rel (!%p13_p3) target bundleno = 4 (0x4), region = 81 }
 0x101   :  { %519 = vsyncpa [#allocation4], 1 }
 0x102   :  { %521 = vsyncpa [#allocation4 + $0x1], 1 }

</bundles_post_ra>
